<compile_context>
chip_gen: v6e
topology: v6e:2x2x1
jax: 0.10.0
libtpu: 0.0.40
codegen_flags: <defaults>
</compile_context>

<pallas_src>
import math

import jax
import jax.numpy as jnp
from jax.experimental import pallas as pl
from jax.experimental.pallas import tpu as pltpu


def timestep_embed_kernel(t_ref, freq_ref, w_sin_ref, w_cos_ref, b_ref, out_ref):
    """One output N-tile of the fused sinusoidal embedding + Linear(dim, dim).

    t_ref:     (B, 1)          f32 timesteps
    freq_ref:  (1, half_dim)   f32 frequencies exp(-i * log(1e4)/(half_dim-1))
    w_sin_ref: (half_dim, TN)  bf16 — rows [0, half_dim) of W.T for this tile
    w_cos_ref: (half_dim, TN)  bf16 — rows [half_dim, dim) of W.T for this tile
    b_ref:     (1, TN)         f32 bias tile
    out_ref:   (B, TN)         f32 output tile
    """
    phase = t_ref[...] * freq_ref[...]                   # (B, half_dim), VPU
    sin_e = jnp.sin(phase).astype(w_sin_ref.dtype)       # EUP; cast to bf16 for MXU
    cos_e = jnp.cos(phase).astype(w_cos_ref.dtype)
    # Split-K: two K=half_dim dots into one f32 accumulator — no concatenate,
    # no cross-lane relayout.
    acc = jnp.dot(sin_e, w_sin_ref[...], preferred_element_type=jnp.float32)
    acc = acc + jnp.dot(cos_e, w_cos_ref[...], preferred_element_type=jnp.float32)
    out_ref[...] = acc + b_ref[...]


def timestep_embedding(t, freqs, w_sin, w_cos, b, *, tn=512):
    """Returns (B, 1, dim) float32, matching TimestepEmbedding.forward('sinusoidal')."""
    B = t.shape[0]
    half_dim, dim = w_sin.shape
    tn = min(tn, dim)
    assert dim % tn == 0 and (tn % 128 == 0 or tn == dim), (dim, tn)

    t2 = t.astype(jnp.float32).reshape(B, 1)
    freqs2 = freqs.astype(jnp.float32).reshape(1, half_dim)
    b2 = b.astype(jnp.float32).reshape(1, dim)

    wt_bytes = (w_sin.size + w_cos.size) * jnp.dtype(w_sin.dtype).itemsize
    cost = pl.CostEstimate(
        flops=2 * B * dim * dim,
        transcendentals=B * dim,  # sin + cos over (B, half_dim) each
        bytes_accessed=wt_bytes + (t2.size + freqs2.size + b2.size + B * dim) * 4,
    )

    out = pl.pallas_call(
        timestep_embed_kernel,
        out_shape=jax.ShapeDtypeStruct((B, dim), jnp.float32),
        grid=(dim // tn,),
        in_specs=[
            pl.BlockSpec((B, 1), lambda j: (0, 0)),          # timesteps (resident)
            pl.BlockSpec((1, half_dim), lambda j: (0, 0)),   # freqs (resident)
            pl.BlockSpec((half_dim, tn), lambda j: (0, j)),  # W.T sin-half, N-tiled
            pl.BlockSpec((half_dim, tn), lambda j: (0, j)),  # W.T cos-half, N-tiled
            pl.BlockSpec((1, tn), lambda j: (0, j)),         # bias, N-tiled
        ],
        out_specs=pl.BlockSpec((B, tn), lambda j: (0, j)),
        compiler_params=pltpu.CompilerParams(
            dimension_semantics=("parallel",),  # megacore sharding on v7x
        ),
        cost_estimate=cost,
    )(t2, freqs2, w_sin, w_cos, b2)
    return out.reshape(B, 1, dim)


def make_params(key, dim):
    """Deterministic synthetic parameters for the 'sinusoidal' branch."""
    half_dim = dim // 2
    # NOTE: half_dim - 1 divides by zero when dim == 2 (matches the PyTorch formula).
    scale = math.log(10000.0) / (half_dim - 1)
    freqs = jnp.exp(jnp.arange(half_dim, dtype=jnp.float32) * -scale)

    kw, kb = jax.random.split(key)
    # nn.Linear(dim, dim): weight (dim_out, dim_in), bias (dim_out,),
    # Uniform(-1/sqrt(dim), 1/sqrt(dim)) like PyTorch's default init.
    bound = 1.0 / math.sqrt(dim)
    w = jax.random.uniform(kw, (dim, dim), jnp.float32, -bound, bound)
    b = jax.random.uniform(kb, (dim,), jnp.float32, -bound, bound)
    w_t = w.T  # (dim_in, dim_out) so the kernel computes emb @ w_t
    # Pre-split into sin/cos halves and store in bf16 (halves weight HBM traffic).
    w_sin = w_t[:half_dim].astype(jnp.bfloat16)
    w_cos = w_t[half_dim:].astype(jnp.bfloat16)
    return freqs, w_sin, w_cos, b


def reference(t, freqs, w_sin, w_cos, b):
    """Pure-JAX reference mirroring the PyTorch forward with bf16-matched weights."""
    tf = t.astype(jnp.float32)
    phase = tf[:, None] * freqs[None, :]
    sin_e = jnp.sin(phase).astype(jnp.bfloat16)
    cos_e = jnp.cos(phase).astype(jnp.bfloat16)
    out = (
        jnp.dot(sin_e, w_sin, preferred_element_type=jnp.float32)
        + jnp.dot(cos_e, w_cos, preferred_element_type=jnp.float32)
        + b.astype(jnp.float32)[None, :]
    )
    return out.reshape(t.shape[0], 1, -1)


if __name__ == "__main__":
    dim = 256          # embedding dim (two 128-wide N tiles -> grid=(2,))
    num_steps = 1000   # diffusion steps
    B = 8              # batch of timesteps (full f32 sublane)

    key = jax.random.PRNGKey(0)
    kparam, kt = jax.random.split(key)
    freqs, w_sin, w_cos, b = make_params(kparam, dim)

    # integer timesteps in [0, num_steps), like the PyTorch module receives
    t = jax.random.randint(kt, (B,), 0, num_steps).astype(jnp.int32)

    out = timestep_embedding(t, freqs, w_sin, w_cos, b, tn=128)
    out = jax.block_until_ready(out)

    ref = reference(t, freqs, w_sin, w_cos, b)
    assert out.shape == (B, 1, dim), out.shape
    # bf16 weights/emb -> relaxed tolerance vs. the bf16-matched reference.
    assert jnp.allclose(out, ref, atol=5e-3, rtol=5e-3), "mismatch vs reference"

    # TODO(synk): 'learnable' (nn.Embedding lookup) and 'none' branches are not
    # implemented; this kernel covers the 'sinusoidal' branch only.
    print("KERNEL_OK")
</pallas_src>

<mosaic_0001>
module attributes {stable_mosaic.version = 11 : i64} {
  func.func @timestep_embed_kernel(%arg0: i32, %arg1: memref<8x1xf32, #tpu.memory_space<vmem>>, %arg2: memref<1x128xf32, #tpu.memory_space<vmem>>, %arg3: memref<128x128xbf16, #tpu.memory_space<vmem>>, %arg4: memref<128x128xbf16, #tpu.memory_space<vmem>>, %arg5: memref<1x128xf32, #tpu.memory_space<vmem>>, %arg6: memref<8x128xf32, #tpu.memory_space<vmem>>) attributes {dimension_semantics = [#tpu.dimension_semantics<parallel>], iteration_bounds = array<i64: 2>, scalar_prefetch = 0 : i64, scratch_operands = 0 : i64, tpu.core_type = #tpu.core_type<tc>, window_params = [{pipeline_mode = #tpu.pipeline_mode<synchronous>, transform_indices = @transform_0, window_bounds = array<i64: 8, 1>}, {pipeline_mode = #tpu.pipeline_mode<synchronous>, transform_indices = @transform_1, window_bounds = array<i64: 1, 128>}, {transform_indices = @transform_2, window_bounds = array<i64: 128, 128>}, {transform_indices = @transform_3, window_bounds = array<i64: 128, 128>}, {transform_indices = @transform_4, window_bounds = array<i64: 1, 128>}, {transform_indices = @transform_5, window_bounds = array<i64: 8, 128>}]} {
    %c0 = arith.constant 0 : index
    %c0_0 = arith.constant 0 : index
    %0 = vector.load %arg1[%c0, %c0_0] : memref<8x1xf32, #tpu.memory_space<vmem>>, vector<8x1xf32>
    %c0_1 = arith.constant 0 : index
    %c0_2 = arith.constant 0 : index
    %1 = vector.load %arg2[%c0_1, %c0_2] : memref<1x128xf32, #tpu.memory_space<vmem>>, vector<1x128xf32>
    %2 = vector.broadcast %0 : vector<8x1xf32> to vector<8x128xf32>
    %3 = vector.broadcast %1 : vector<1x128xf32> to vector<8x128xf32>
    %4 = arith.mulf %2, %3 : vector<8x128xf32>
    %5 = math.sin %4 : vector<8x128xf32>
    %6 = arith.truncf %5 : vector<8x128xf32> to vector<8x128xbf16>
    %7 = math.cos %4 : vector<8x128xf32>
    %8 = arith.truncf %7 : vector<8x128xf32> to vector<8x128xbf16>
    %c0_3 = arith.constant 0 : index
    %c0_4 = arith.constant 0 : index
    %9 = vector.load %arg3[%c0_3, %c0_4] : memref<128x128xbf16, #tpu.memory_space<vmem>>, vector<128x128xbf16>
    %cst = arith.constant dense<0.000000e+00> : vector<8x128xf32>
    %10 = tpu.matmul %6, %9, %cst {dimension_numbers = #tpu.dot_dimension_numbers<[1], [0], [0], [1], [0, 0, 1, 1], [], []>} : vector<8x128xbf16>, vector<128x128xbf16>, vector<8x128xf32> -> vector<8x128xf32>
    %c0_5 = arith.constant 0 : index
    %c0_6 = arith.constant 0 : index
    %11 = vector.load %arg4[%c0_5, %c0_6] : memref<128x128xbf16, #tpu.memory_space<vmem>>, vector<128x128xbf16>
    %cst_7 = arith.constant dense<0.000000e+00> : vector<8x128xf32>
    %12 = tpu.matmul %8, %11, %cst_7 {dimension_numbers = #tpu.dot_dimension_numbers<[1], [0], [0], [1], [0, 0, 1, 1], [], []>} : vector<8x128xbf16>, vector<128x128xbf16>, vector<8x128xf32> -> vector<8x128xf32>
    %13 = arith.addf %10, %12 : vector<8x128xf32>
    %c0_8 = arith.constant 0 : index
    %c0_9 = arith.constant 0 : index
    %14 = vector.load %arg5[%c0_8, %c0_9] : memref<1x128xf32, #tpu.memory_space<vmem>>, vector<1x128xf32>
    %15 = vector.broadcast %14 : vector<1x128xf32> to vector<8x128xf32>
    %16 = arith.addf %13, %15 : vector<8x128xf32>
    %c0_10 = arith.constant 0 : index
    %c0_11 = arith.constant 0 : index
    %17 = vector.load %arg6[%c0_10, %c0_11] : memref<8x128xf32, #tpu.memory_space<vmem>>, vector<8x128xf32>
    tpu.vector_store %arg6[%c0_10, %c0_11], %16 {strides = array<i32>} : memref<8x128xf32, #tpu.memory_space<vmem>>, vector<8x128xf32>,
    return
  }
  func.func @transform_0(%arg0: i32) -> (i32, i32) {
    %c0_i32 = arith.constant 0 : i32
    %c0_i32_0 = arith.constant 0 : i32
    %c0_i32_1 = arith.constant 0 : i32
    return %c0_i32, %c0_i32_0 : i32, i32
  }
  func.func @transform_1(%arg0: i32) -> (i32, i32) {
    %c0_i32 = arith.constant 0 : i32
    %c0_i32_0 = arith.constant 0 : i32
    %c0_i32_1 = arith.constant 0 : i32
    return %c0_i32, %c0_i32_0 : i32, i32
  }
  func.func @transform_2(%arg0: i32) -> (i32, i32) {
    %c0_i32 = arith.constant 0 : i32
    %c0_i32_0 = arith.constant 0 : i32
    return %c0_i32, %arg0 : i32, i32
  }
  func.func @transform_3(%arg0: i32) -> (i32, i32) {
    %c0_i32 = arith.constant 0 : i32
    %c0_i32_0 = arith.constant 0 : i32
    return %c0_i32, %arg0 : i32, i32
  }
  func.func @transform_4(%arg0: i32) -> (i32, i32) {
    %c0_i32 = arith.constant 0 : i32
    %c0_i32_0 = arith.constant 0 : i32
    return %c0_i32, %arg0 : i32, i32
  }
  func.func @transform_5(%arg0: i32) -> (i32, i32) {
    %c0_i32 = arith.constant 0 : i32
    %c0_i32_0 = arith.constant 0 : i32
    return %c0_i32, %arg0 : i32, i32
  }
}

</mosaic_0001>

<bundles_post_ra>
// kernel: tpu_custom_call.1
= control target key start
LH: loop header
LB: loop body
LE: loop exit
PB: predicated region body
PF: predicated region fallthrough
CT: control target
= control target key end

     0   :  { %s1481_s0 = inlined_call_operand.vmem [shape: f32[8,1], index: 0, kind: input, shape index: {}]   ;;  %s1482_s1 = inlined_call_operand.vmem [shape: f32[1,128], index: 1, kind: input, shape index: {}]   ;;  %s1483_s2 = inlined_call_operand.hbm [shape: bf16[128,256], index: 2, kind: input, shape index: {}]   ;;  %s1484_s3 = inlined_call_operand.hbm [shape: bf16[128,256], index: 3, kind: input, shape index: {}]   ;;  %s1485_s4 = inlined_call_operand.vmem [shape: f32[1,256], index: 4, kind: input, shape index: {}]   ;;  %s1486_s5 = inlined_call_operand.hbm [shape: f32[8,256], index: 5, kind: output, shape index: {}]  }
   0x1   :  { %1490 = sst [smem:[#allocation11_spill]] %s1483_s2 }
   0x2   :  { %10 = vsyncpa [#allocation3], 0 }
   0x3   :  { %12 = vsyncpa [#allocation3 + $0x1], 0 }
   0x4   :  { %13 = vsyncpa [#allocation6], 0 }
   0x5   :  { %15 = vsyncpa [#allocation6 + $0x1], 0 }
   0x6   :  { %16 = vsyncpa [#allocation4], 0 }
   0x7   :  { %18 = vsyncpa [#allocation4 + $0x1], 0  ;;  %s1210_s18 = smov 0   ;;  %s1212_s19 = smov 0  }
   0x8   :  { %s1214_s20 = smov 0   ;;  %s1216_s21 = smov 0  }
   0x9 LB: > { %s1231_s22 = sadd.s32 4294967295, %s1163_s21   ;;  %s852_s23 = sadd.s32 4294967294, %s1163_s21   ;;  %s1163_s21 = sphi %s1216_s21, %s1507_s21   ;;  %s1159_s20 = sphi %s1214_s20, %s1506_s20   ;;  %s1155_s19 = sphi %s1212_s19, %s1505_s19   ;;  %s1151_s18 = sphi %s1210_s18, %s1504_s18  }
   0xa   : > { %s1235_s24 = sadd.s32 1, %s1163_s21   ;;  %s73_s25 = sadd.s32 1, %s1159_s20 }
   0xb   : > { %s70_s26 = ssub.s32 %s1163_s21, %s1235_s24  ;;  %p80_p0 = scmp.ne.s32.totalorder %s1159_s20, %s1155_s19 }
   0xc   : > { %p71_p1 = scmp.eq.s32.totalorder %s70_s26, 0  ;;  %p81_p2 = scmp.eq.s32.totalorder %s1163_s21, 0 }
   0xd   : > { %p86_p3 = scmp.ne.s32.totalorder %s1155_s19, %s1151_s18  ;;  %p87_p4 = scmp.eq.s32.totalorder %s1231_s22, 0 }
   0xe   : > { %s1247_s27 = scalar_select %p71_p1, %s1159_s20, %s73_s25  }
   0xf   : > { %p1249_p5 = por %p81_p2, %p80_p0  ;;  %p1253_p6 = por %p87_p4, %p86_p3 }
  0x10   : > { %p162_p7 = scmp.eq.s32.totalorder %s1231_s22, 1  ;;  %p168_p8 = scmp.eq.s32.totalorder %s852_s23, 1 }
  0x11   : > { %s1492_s29 = scalar_select %p1253_p6, 1, 0 }
  0x12   : > { %p972_p10 = scmp.lt.s32.totalorder %s1163_s21, 2  ;;  %p1260_p11 = por %p162_p7, %p80_p0 }
  0x13   : > { %p1264_p12 = por %p168_p8, %p86_p3  ;;  %s1269_s7 = sand.u32 1, %s1159_s20  }
  0x14   : > { %s1493_s30 = scalar_select %p1260_p11, 1, 0 }
  0x15   : > { %s1494_s6 = scalar_select %p1264_p12, 1, 0 }
  0x16   : > { %s856_s8 = sshll.u32 %s1163_s21, 6  ;;  %s855_s9 = sshll.u32 %s1269_s7, 6 }
  0x17   : > { %s1495_s2 = sld [smem:[#allocation11_spill]]  ;;  %s198_s13 = scalar_lea.vmem [#allocation2], %s855_s9 }
  0x18   : > { %s204_s14 = sshll.u32 %s198_s13, 4  ;;  %p1284_p13 = pnand %p972_p10, %p1249_p5  ;;  %s1288_s14 = int_to_ptr.vmem [resolvable:$true] %s204_s14 }
  0x19   : > { %s195_s16 = scalar_lea.sflag [#allocation3], %s1269_s7 }
  0x1a   : > { %p1041_p2 = pneg %p1284_p13 }
  0x1d   : > { %s1278_s12 = scalar_lea.hbm %s1495_s2, %s856_s8  ;;  %s1044_s26 = scalar_lea.hbm %s1495_s2, 2048 }
  0x1e   : > { %s1039_s17 = scalar_lea.hbm %s1278_s12, 1024  ;;  %p1045_p5 = scmp.lt.s32.totalorder %s1278_s12, %s1495_s2 }
  0x1f   : > { %p1040_p1 = scmp.ne.s32.totalorder %s1278_s12, %s1039_s17  ;;  %p1046_p7 = scmp.lt.s32.totalorder %s1044_s26, %s1039_s17 }
  0x21   : > { %p1042_p3 = pnand %p1041_p2, %p1040_p1  ;;  %p1047_p8 = por %p1046_p7, %p1045_p5 }
  0x23   : > { %p1043_p4 = pneg %p1042_p3 }
  0x25   : > { %p1048_p10 = pnand %p1047_p8, %p1043_p4 }
  0x27   : > { %1051 = shalt.err (!%p1048_p10)
}
  0x28   : > { %s1052_s11 = scalar_lea.vmem %s1288_s14, 1024  ;;  %s1165_s13 = smov [#allocation2]  }
  0x29   : > { %p1053_p9 = scmp.ne.s32.totalorder %s1288_s14, %s1052_s11  ;;  %s1057_s23 = sshll.u32 %s1165_s13, 4  ;;  %s1058_s23 = int_to_ptr.vmem [resolvable:$false] %s1057_s23 }
  0x2a   : > { %s1059_s25 = scalar_lea.vmem %s1058_s23, 2048  ;;  %p1060_p0 = scmp.lt.s32.totalorder %s1288_s14, %s1058_s23 }
  0x2b   : > { %p1055_p1 = pnand %p1053_p9, %p1041_p2  ;;  %p1061_p12 = scmp.lt.s32.totalorder %s1059_s25, %s1052_s11 }
  0x2d   : > { %p1056_p3 = pneg %p1055_p1  ;;  %p1062_p11 = por %p1061_p12, %p1060_p0 }
  0x2f   : > { %p1063_p5 = pnand %p1062_p11, %p1056_p3 }
  0x31   : > { %1066 = shalt.err (!%p1063_p5)
}
  0x32   : > { %s1488_s17 = smov 128   ;;  %s1167_s26 = smov 64  }
  0x33   : > { %s1168_s28 = smov 4   ;;  %p238_p9 = scmp.lt.s32.totalorder %s1163_s21, 3 }
  0x34   : > { %964 = dma.hbm_to_vmem [thread:$0]  (!%p1284_p13), %s1278_s12, 1024, %s1288_s14, %s195_s16, %s1488_s17, %s1167_s26, %s1168_s28  }
  0x35   : > { %s1327_s13 = scalar_lea.hbm %s1484_s3, %s856_s8  ;;  %p1497_p11 = scmp.ge.s32.totalorder %s1163_s21, 1 }
  0x36   : > { %s218_s25 = scalar_lea.vmem [#allocation5], %s855_s9  ;;  %s215_s12 = scalar_lea.sflag [#allocation6], %s1269_s7 }
  0x37   : > { %p1331_p12 = pnand %p1497_p11, %p238_p9  ;;  %s224_s2 = sshll.u32 %s218_s25, 4  ;;  %s1337_s2 = int_to_ptr.vmem [resolvable:$true] %s224_s2 }
  0x38   : > { %s1067_s14 = scalar_lea.hbm %s1327_s13, 1024  ;;  %s1072_s10 = scalar_lea.hbm %s1484_s3, 2048 }
  0x39   : > { %p1068_p0 = scmp.ne.s32.totalorder %s1327_s13, %s1067_s14  ;;  %p1073_p8 = scmp.lt.s32.totalorder %s1327_s13, %s1484_s3 }
  0x3a   : > { %p1074_p10 = scmp.lt.s32.totalorder %s1072_s10, %s1067_s14 }
  0x3b   : > { %p1070_p4 = pnand %p1068_p0, %p1041_p2 }
  0x3c   : > { %p1075_p1 = por %p1074_p10, %p1073_p8 }
  0x3d   : > { %p1071_p7 = pneg %p1070_p4 }
  0x3f   : > { %p1076_p3 = pnand %p1075_p1, %p1071_p7 }
  0x41   : > { %1079 = shalt.err (!%p1076_p3)
}
  0x42   : > { %s1080_s7 = scalar_lea.vmem %s1337_s2, 1024  ;;  %s1169_s9 = smov [#allocation5]  }
  0x43   : > { %p1081_p5 = scmp.ne.s32.totalorder %s1337_s2, %s1080_s7  ;;  %s1085_s25 = sshll.u32 %s1169_s9, 4  ;;  %s1086_s25 = int_to_ptr.vmem [resolvable:$false] %s1085_s25 }
  0x44   : > { %s1087_s8 = scalar_lea.vmem %s1086_s25, 2048  ;;  %p1088_p0 = scmp.lt.s32.totalorder %s1337_s2, %s1086_s25 }
  0x45   : > { %p1083_p9 = pnand %p1081_p5, %p1041_p2  ;;  %p1089_p4 = scmp.lt.s32.totalorder %s1087_s8, %s1080_s7 }
  0x47   : > { %p1084_p11 = pneg %p1083_p9  ;;  %p1090_p6 = por %p1089_p4, %p1088_p0 }
  0x49   : > { %p1091_p8 = pnand %p1090_p6, %p1084_p11 }
  0x4b   : > { %1094 = shalt.err (!%p1091_p8)
}
  0x4c   : > { %s1499_s17 = smov 128   ;;  %242 = sbr.rel (%p1331_p12) target bundleno = 507 (0x1fb), region = 40 }
  0x4d   : > { %967 = dma.hbm_to_vmem [thread:$0]  (!%p1284_p13), %s1327_s13, 1024, %s1337_s2, %s215_s12, %s1499_s17, %s1167_s26, %s1168_s28  }
  0x4e   : > { %s1368_s14 = sand.u32 (!%p1331_p12), 1, %s1155_s19   ;;  %p1500_p6 = scmp.ne.s32.totalorder (!%p1331_p12), %s1492_s29, 0 }
  0x4f   : > { %s860_s16 = sshll.u32 (!%p1331_p12), %s1368_s14, 6  ;;  %s245_s10 = scalar_lea.sflag (!%p1331_p12), [#allocation3], %s1368_s14 }
  0x50   : > { %s1372_s11 = scalar_lea.vmem (!%p1331_p12), [#allocation2], %s860_s16 }
  0x51   : > { %1138 = dma.done.wait (%p1500_p6), %s245_s10, 1024  }
  0x52   : > { %1140 = vsyncadd (%p1500_p6), %s245_s10, 4294966272  ;;  %s254_s2 = scalar_lea.sflag [#allocation6], %s1368_s14  ;;  %s1379_s15 = scalar_lea.vmem [#allocation5], %s860_s16 }
  0x53   : > { %1142 = dma.done.wait (%p1500_p6), %s254_s2, 1024  }
  0x54   : > { %1144 = vsyncadd (%p1500_p6), %s254_s2, 4294966272  ;;  %v1170_v0 = vmov 0   ;;  %v296_v1 = vld [vmem:[%s1481_s0] sm:$0xff]  ;;  %v1019_v2 = vld [vmem:[%s1379_s15 + $0x38] sm:$0xff]   ;;  %v1171_v4 = vmov 0.0   ;;  %vm1172_vm0 = vmmov 0  }
  0x55   : > { %1018 = vset.pattern.permute.xlu0 %v1170_v0  ;;  %v1020_v3 = vld [vmem:[%s1372_s11 + $0x38] sm:$0xff]   ;;  %911 = vmatprep.subr.bf16.mxu0 %v1171_v4  ;;  %v1021_v5 = vld [vmem:[%s1379_s15 + $0x30] sm:$0xff]   ;;  %v1023_v7 = vld [vmem:[%s1379_s15 + $0x28] sm:$0xff]   ;;  %v1173_v32 = vmov 683565275   ;;  %p292_p13 = scmp.lt.s32.totalorder %s1231_s22, 1 }
  0x56   : > { %300 = vperm.xlu0 %1018, %v296_v1   ;;  %931 = vmatprep.subr.bf16.mxu1 %v1171_v4  ;;  %v1022_v6 = vld [vmem:[%s1372_s11 + $0x30] sm:$0xff]   ;;  %v1024_v8 = vld [vmem:[%s1372_s11 + $0x28] sm:$0xff]   ;;  %v1025_v9 = vld [vmem:[%s1379_s15 + $0x20] sm:$0xff]   ;;  %v1174_v34 = vmov 2475754826   ;;  %s862_s12 = sshll.u32 %s1368_s14, 3 }
  0x57   : > { %912 = vmatpush3.bf16.msra.mxu0 %v1019_v2  ;;  %932 = vmatpush3.bf16.msra.mxu1 %v1020_v3  ;;  %v1026_v10 = vld [vmem:[%s1372_s11 + $0x20] sm:$0xff]   ;;  %v1027_v11 = vld [vmem:[%s1379_s15 + $0x18] sm:$0xff]   ;;  %v1029_v13 = vld [vmem:[%s1379_s15 + $0x10] sm:$0xff]   ;;  %v1175_v37 = vmov 2131351028   ;;  %s293_s23 = scalar_select %p292_p13, %s1231_s22, 1 }
  0x58   : > { %913 = vmatprep.subr.bf16.mxu0 %v1171_v4  ;;  %933 = vmatprep.subr.bf16.mxu1 %v1171_v4  ;;  %v1028_v12 = vld [vmem:[%s1372_s11 + $0x18] sm:$0xff]   ;;  %v1030_v14 = vld [vmem:[%s1372_s11 + $0x10] sm:$0xff]   ;;  %v1031_v15 = vld [vmem:[%s1379_s15 + $0x8] sm:$0xff]   ;;  %v1176_v40 = vmov 2102212464   ;;  %s890_s8 = sshll.u32 %s1231_s22, 7 }
  0x59   : > { %927 = vmatprep.mubr.msk.bf16.mxu0 %vm1172_vm0, %v1171_v4  ;;  %947 = vmatprep.mubr.msk.bf16.mxu1 %vm1172_vm0, %v1171_v4  ;;  %v1032_v16 = vld [vmem:[%s1372_s11 + $0x8] sm:$0xff]   ;;  %v1033_v17 = vld [vmem:[%s1379_s15] sm:$0xff]   ;;  %v1177_v43 = vmov 920167782   ;;  %v1178_v46 = vmov 1326507024   ;;  %s294_s25 = scalar_lea.vmem %s1485_s4, %s293_s23  ;;  %s1438_s2 = scalar_lea.hbm %s1486_s5, %s890_s8 }
  0x5a   : > { %v1034_v18 = vld [vmem:[%s1372_s11] sm:$0xff]   ;;  %s291_s17 = scalar_lea.vmem [#allocation7], %s862_s12  ;;  %s737_s22 = scalar_lea.sflag [#allocation4], %s1368_s14 }
  0x5b   : > { %914 = vmatpush3.bf16.msra.mxu0 %v1021_v5  ;;  %934 = vmatpush3.bf16.msra.mxu1 %v1022_v6  ;;  %v863_v19 = vld [vmem:[%s1482_s1] ss:$0 sm:$0xff]  ;;  %s750_s16 = sshll.u32 %s291_s17, 4  ;;  %p1501_p12 = scmp.ne.s32.totalorder %s1493_s30, 0  ;;  %s1440_s16 = int_to_ptr.vmem [resolvable:$true] %s750_s16 }
  0x5c   : > { %915 = vmatprep.subr.bf16.mxu0 %v1171_v4  ;;  %935 = vmatprep.subr.bf16.mxu1 %v1171_v4  ;;  %s1095_s15 = scalar_lea.vmem %s1440_s16, 128  ;;  %s1179_s26 = smov [#allocation7]  }
  0x5d   : > { %p1096_p2 = scmp.ne.s32.totalorder %s1440_s16, %s1095_s15  ;;  %s1099_s28 = sshll.u32 %s1179_s26, 4  ;;  %s1100_s28 = int_to_ptr.vmem [resolvable:$false] %s1099_s28 }
  0x5e   : > { %s1101_s29 = scalar_lea.vmem %s1100_s28, 256  ;;  %p1102_p1 = scmp.lt.s32.totalorder %s1440_s16, %s1100_s28 }
  0x5f   : > { %916 = vmatpush3.bf16.msra.mxu0 %v1023_v7  ;;  %936 = vmatpush3.bf16.msra.mxu1 %v1024_v8  ;;  %p1097_p7 = pnand %p1096_p2, %p1501_p12  ;;  %p1103_p3 = scmp.lt.s32.totalorder %s1101_s29, %s1095_s15 }
  0x60   : > { %917 = vmatprep.subr.bf16.mxu0 %v1171_v4  ;;  %937 = vmatprep.subr.bf16.mxu1 %v1171_v4 }
  0x61   : > { %p1098_p10 = pneg %p1097_p7  ;;  %p1104_p5 = por %p1103_p3, %p1102_p1 }
  0x63   : > { %918 = vmatpush3.bf16.msra.mxu0 %v1025_v9  ;;  %938 = vmatpush3.bf16.msra.mxu1 %v1026_v10  ;;  %p1105_p9 = pnand %p1104_p5, %p1098_p10 }
  0x64   : > { %919 = vmatprep.subr.bf16.mxu0 %v1171_v4  ;;  %939 = vmatprep.subr.bf16.mxu1 %v1171_v4 }
  0x67   : > { %920 = vmatpush3.bf16.msra.mxu0 %v1027_v11  ;;  %940 = vmatpush3.bf16.msra.mxu1 %v1028_v12 }
  0x68   : > { %921 = vmatprep.subr.bf16.mxu0 %v1171_v4  ;;  %941 = vmatprep.subr.bf16.mxu1 %v1171_v4 }
  0x6b   : > { %922 = vmatpush3.bf16.msra.mxu0 %v1029_v13  ;;  %942 = vmatpush3.bf16.msra.mxu1 %v1030_v14 }
  0x6c   : > { %923 = vmatprep.subr.bf16.mxu0 %v1171_v4  ;;  %943 = vmatprep.subr.bf16.mxu1 %v1171_v4 }
  0x6f   : > { %924 = vmatpush3.bf16.msra.mxu0 %v1031_v15  ;;  %944 = vmatpush3.bf16.msra.mxu1 %v1032_v16 }
  0x70   : > { %925 = vmatprep.subr.bf16.mxu0 %v1171_v4  ;;  %945 = vmatprep.subr.bf16.mxu1 %v1171_v4 }
  0x73   : > { %926 = vmatpush3.bf16.msra.mxu0 %v1033_v17  ;;  %946 = vmatpush3.bf16.msra.mxu1 %v1034_v18 }
  0xd1   : > { %v301_v20 = vpop.permute.xlu0 %300 }
  0xd2   : > { %v1407_v21 = vmul.f32 %v863_v19, %v301_v20 }
  0xd4   : > { %v313_v22 = vand.u32 2139095040, %v1407_v21  ;;  %v310_v26 = vand.u32 2147483647, %v1407_v21  ;;  %vm312_vm8 = vcmp.lt.s32.totalorder %v1407_v21, 0  ;;  %vm402_vm0 = vweird.f32 %v1407_v21 }
  0xd6   : > { %v314_v23 = vshrl.u32 %v313_v22, 23  ;;  %v317_v29 = vand.u32 8388607, %v310_v26  ;;  %vm311_vm9 = vcmp.le.f32.partialorder %v310_v26, 0.7853982 }
  0xd8   : > { %v864_v24 = vadd.s32 4294967169, %v314_v23  ;;  %v318_v48 = vor.u32 8388608, %v317_v29 }
  0xda   : > { %v320_v25 = vadd.s32 1, %v864_v24  ;;  %v358_v62 = vshll.u32 %v318_v48, 8 }
  0xdc   : > { %vm321_vm1 = vcmp.gt.s32.totalorder %v320_v25, 0 }
  0xdd   : > { %v322_v27 = vsel %vm321_vm1, %v320_v25, 0 }
  0xde   : > { %v324_v28 = vand.u32 31, %v322_v27  ;;  %v323_v31 = vshrl.u32 %v322_v27, 5 }
  0xe0   : > { %v325_v30 = vsub.s32 32, %v324_v28  ;;  %v327_v33 = vshll.u32 %v1173_v32, %v324_v28  ;;  %v330_v35 = vshll.u32 %v1174_v34, %v324_v28  ;;  %v333_v39 = vshll.u32 %v1175_v37, %v324_v28 }
  0xe1   : > { %v336_v42 = vshll.u32 %v1176_v40, %v324_v28  ;;  %v339_v45 = vshll.u32 %v1177_v43, %v324_v28  ;;  %vm342_vm2 = vcmp.lt.s32.totalorder %v323_v31, 1  ;;  %vm345_vm3 = vcmp.lt.s32.totalorder %v323_v31, 4 }
  0xe2   : > { %v328_v36 = vshrl.u32 %v1174_v34, %v325_v30  ;;  %v331_v38 = vshrl.u32 %v1175_v37, %v325_v30  ;;  %v334_v41 = vshrl.u32 %v1176_v40, %v325_v30  ;;  %v337_v44 = vshrl.u32 %v1177_v43, %v325_v30 }
  0xe3   : > { %v340_v47 = vshrl.u32 %v1178_v46, %v325_v30  ;;  %v326_v57 = vshrl.u32 %v1173_v32, %v325_v30  ;;  %vm344_vm4 = vcmp.lt.s32.totalorder %v323_v31, 3  ;;  %vm343_vm5 = vcmp.lt.s32.totalorder %v323_v31, 2 }
  0xe4   : > { %v329_v49 = vor.u32 %v328_v36, %v327_v33  ;;  %v332_v50 = vor.u32 %v331_v38, %v330_v35  ;;  %v335_v51 = vor.u32 %v334_v41, %v333_v39  ;;  %v338_v52 = vor.u32 %v337_v44, %v336_v42 }
  0xe5   : > { %v341_v53 = vor.u32 %v340_v47, %v339_v45 }
  0xe6   : > { %v347_v54 = vsel %vm345_vm3, %v335_v51, 2102212464  ;;  %v350_v55 = vsel %vm342_vm2, %v329_v49, %v332_v50  ;;  %v354_v56 = vsel %vm342_vm2, %v332_v50, %v335_v51  ;;  %v351_v58 = vsel %vm345_vm3, %v338_v52, 920167782 }
  0xe7   : > { %v355_v59 = vsel %vm345_vm3, %v341_v53, 1326507024  ;;  %v352_v60 = vsel %vm344_vm4, %v335_v51, %v351_v58  ;;  %v346_v63 = vsel %vm342_vm2, %v326_v57, %v329_v49  ;;  %v348_v0 = vsel %vm344_vm4, %v332_v50, %v347_v54 }
  0xe8   : > { %v356_v61 = vsel %vm344_vm4, %v338_v52, %v355_v59  ;;  %v353_v1 = vsel %vm343_vm5, %v350_v55, %v352_v60  ;;  %v349_v7 = vsel %vm343_vm5, %v346_v63, %v348_v0 }
  0xe9   : > { %v357_v2 = vsel %vm343_vm5, %v354_v56, %v356_v61  ;;  %v1416_v5 = vmul.u32.u64.low %v358_v62, %v353_v1  ;;  %v1417_v6 = vmul.u32.u64.high %v358_v62, %v353_v1, %v1416_v5  ;;  %v365_v9 = vmul.u32 %v358_v62, %v349_v7 }
  0xea   : > { %v1413_v3 = vmul.u32.u64.low %v358_v62, %v357_v2  ;;  %v1414_v4 = vmul.u32.u64.high %v358_v62, %v357_v2, %v1413_v3 }
  0xeb   : > { %v368_v8 = vadd.s32 1, %v1417_v6 }
  0xec   : > { %vm367_vm6 = vc.u32 %v1414_v4, %v1416_v5  ;;  %v366_v22 = vadd.s32 %v1416_v5, %v1414_v4 }
  0xed   : > { %v369_v10 = vsel %vm367_vm6, %v368_v8, %v1417_v6 }
  0xee   : > { %v370_v11 = vadd.s32 %v369_v10, %v365_v9 }
  0xf0   : > { %v371_v12 = vadd.s32 536870912, %v370_v11 }
  0xf2   : > { %v372_v13 = vshrl.u32 %v371_v12, 30 }
  0xf4   : > { %v373_v14 = vshll.u32 %v372_v13, 30  ;;  %v396_v36 = vsub.s32 4, %v372_v13 }
  0xf6   : > { %v374_v15 = vsub.s32 %v370_v11, %v373_v14  ;;  %v397_v39 = vsel %vm312_vm8, %v396_v36, %v372_v13 }
  0xf7   : > { %v399_v40 = vsel %vm311_vm9, 0, %v397_v39 }
  0xf8   : > { %v376_v16 = vsub.s32 0, %v374_v15  ;;  %v403_v41 = vadd.s32 3, %v399_v40  ;;  %v508_v42 = vand.u32 3, %v399_v40 }
  0xfa   : > { %v865_v17 = vmin.u32 %v376_v16, %v374_v15  ;;  %v404_v43 = vand.u32 3, %v403_v41  ;;  %vm513_vm10 = vcmp.eq.s32.totalorder %v508_v42, 2  ;;  %vm510_vm12 = vcmp.eq.s32.totalorder %v508_v42, 0 }
  0xfb   : > { %vm509_vm14 = vcmp.lt.s32.totalorder %v508_v42, 2 }
  0xfc   : > { %v378_v18 = vclz %v865_v17  ;;  %vm409_vm11 = vcmp.eq.s32.totalorder %v404_v43, 2  ;;  %vm406_vm13 = vcmp.eq.s32.totalorder %v404_v43, 0  ;;  %vm405_vm15 = vcmp.lt.s32.totalorder %v404_v43, 2 }
  0xfe   : > { %v866_v19 = vadd.s32 4294967294, %v378_v18 }
 0x100   : > { %vm867_vm7 = vcmp.lt.s32.totalorder %v866_v19, 0 }
 0x101   : > { %v381_v20 = vsel %vm867_vm7, 0, %v866_v19 }
 0x102   : > { %v382_v23 = vsub.s32 32, %v381_v20  ;;  %v386_v24 = vsub.s32 4294967266, %v381_v20  ;;  %v383_v25 = vshll.u32 %v374_v15, %v381_v20 }
 0x104   : > { %v384_v27 = vshrl.u32 %v366_v22, %v382_v23  ;;  %v387_v28 = vadd.s32 127, %v386_v24 }
 0x106   : > { %v385_v29 = vor.u32 %v384_v27, %v383_v25  ;;  %v388_v30 = vshll.u32 %v387_v28, 23 }
 0x108   : > { %v389_v31 = vor.u32 4788187, %v388_v30  ;;  %v392_v33 = vcvt.s32.f32 %v385_v29 }
 0x10a   : > { %v390_v32 = vand.u32 2147483647, %v389_v31 }
 0x10c   : > { %v393_v34 = vmul.f32 %v392_v33, %v390_v32 }
 0x10e   : > { %v394_v35 = vxor.u32 2147483648, %v393_v34 }
 0x110   : > { %v395_v37 = vsel %vm312_vm8, %v394_v35, %v393_v34 }
 0x111   : > { %v398_v38 = vsel %vm311_vm9, %v1407_v21, %v395_v37  ;;  %v888_v21 = vld [vmem:[%s294_s25] ss:$0 sm:$0xff] }
 0x112   : > { %1035 = vcosq.f32 %v398_v38 }
 0x113   : > { %1037 = vsinq.f32 %v398_v38 }
 0x11f   : > { %v1036_v44 = vpop.eup %1035 }
 0x120   : > { %v1038_v45 = vpop.eup %1037  ;;  %v410_v46 = vxor.u32 2147483648, %v1036_v44 }
 0x121   : > { %v407_v47 = vxor.u32 2147483648, %v1038_v45 }
 0x122   : > { %v515_v48 = vsel %vm513_vm10, %v410_v46, %v1038_v45  ;;  %v411_v26 = vsel %vm409_vm11, %v410_v46, %v1038_v45 }
 0x123   : > { %v512_v49 = vsel %vm510_vm12, %v1036_v44, %v407_v47  ;;  %v408_v50 = vsel %vm406_vm13, %v1036_v44, %v407_v47 }
 0x124   : > { %v516_v51 = vsel %vm509_vm14, %v512_v49, %v515_v48  ;;  %v412_v52 = vsel %vm405_vm15, %v408_v50, %v411_v26 }
 0x125   : > { %v517_v53 = vsel %vm402_vm0, nan, %v516_v51  ;;  %v413_v54 = vsel %vm402_vm0, nan, %v412_v52 }
 0x126   : > { %v518_v55 = vpack.c.bf16 %v517_v53, %v517_v53  ;;  %v414_v56 = vpack.c.bf16 %v413_v54, %v413_v54 }
 0x128   : > { %928 = vmatmul.mubr.bf16.vlgmr.msra.gmra.mxu0 %v518_v55  ;;  %948 = vmatmul.mubr.bf16.vlgmr.msra.gmra.mxu1 %v414_v56 }
 0x1e8   : > { %v633_v57 = vpop.f32.mrf.mxu0  ;;  %v721_v58 = vpop.f32.mrf.mxu1 }
 0x1e9   : > { %v722_v59 = vadd.f32 %v721_v58, %v633_v57 }
 0x1ea   : > { %v929_v60 = vpop.f32.mrf.mxu0  ;;  %v949_v61 = vpop.f32.mrf.mxu1 }
 0x1eb   : > { %v734_v62 = vadd.f32 %v888_v21, %v722_v59 }
 0x1ec   : > { %v636_v63 = vpop.f32.mrf.mxu0  ;;  %v724_v0 = vpop.f32.mrf.mxu1 }
 0x1ed   : > { %735 = vst [vmem:[%s291_s17] sm:$0xff] %v734_v62 }
 0x1ee   : > { %v930_v1 = vpop.f32.mrf.mxu0  ;;  %v950_v2 = vpop.f32.mrf.mxu1 }
 0x1ef   : > { %1108 = shalt.err (!%p1105_p9)
}
 0x1f0   : > { %s1109_s13 = scalar_lea.hbm %s1438_s2, 128  ;;  %s1113_s12 = scalar_lea.hbm %s1486_s5, 256 }
 0x1f1   : > { %p1110_p11 = scmp.ne.s32.totalorder %s1438_s2, %s1109_s13  ;;  %p1114_p8 = scmp.lt.s32.totalorder %s1438_s2, %s1486_s5 }
 0x1f2   : > { %p1115_p6 = scmp.lt.s32.totalorder %s1113_s12, %s1109_s13 }
 0x1f3   : > { %p1111_p0 = pnand %p1110_p11, %p1501_p12 }
 0x1f4   : > { %p1116_p13 = por %p1115_p6, %p1114_p8 }
 0x1f5   : > { %p1112_p4 = pneg %p1111_p0 }
 0x1f7   : > { %p1117_p2 = pnand %p1116_p13, %p1112_p4 }
 0x1f9   : > { %1120 = shalt.err (!%p1117_p2)
}
 0x1fa   : > { %959 = dma.vmem_to_hbm [thread:$0]  (%p1501_p12), %s1440_s16, 128, %s1438_s2, %s737_s22  }
 0x1fb PF: > { %s762_s25 = sand.u32 1, %s1151_s18   ;;  %p1502_p7 = scmp.ne.s32.totalorder %s1494_s6, 0 }
 0x1fc   : > { %p1503_p10 = scmp.ge.s32.totalorder %s1163_s21, 2  ;;  %s763_s8 = scalar_lea.sflag [#allocation4], %s762_s25 }
 0x1fe   : > { %p969_p1 = pnand %p1503_p10, %p1502_p7 }
 0x200   : > { %p970_p3 = pneg %p969_p1 }
 0x202   : > { %1146 = dma.done.wait (%p970_p3), %s763_s8, 128  }
 0x203   : > { %1148 = vsyncadd (%p970_p3), %s763_s8, 4294967168  ;;  %p21_p5 = scmp.ge.s32.totalorder %s1235_s24, 4   ;;  %s1504_s18 = smov %s1155_s19 }
 0x204   : > { %s1505_s19 = smov %s1159_s20  ;;  %s1506_s20 = smov %s1247_s27 }
 0x205   : > { %s1507_s21 = smov %s1235_s24  ;;  %23 = sbr.rel (!%p21_p5) target bundleno = 9 (0x9), region = 101 }
 0x20a   :  { %768 = vsyncpa [#allocation3], 1 }
 0x20b   :  { %770 = vsyncpa [#allocation3 + $0x1], 1 }
 0x20c   :  { %771 = vsyncpa [#allocation6], 1 }
 0x20d   :  { %773 = vsyncpa [#allocation6 + $0x1], 1 }
 0x20e   :  { %774 = vsyncpa [#allocation4], 1 }
 0x20f   :  { %776 = vsyncpa [#allocation4 + $0x1], 1 }

</bundles_post_ra>
